<compile_context>
chip_gen: v7x
topology: tpu7x:2x2x1
jax: 0.10.0
libtpu: 0.0.40
codegen_flags: <defaults>
</compile_context>

<pallas_src>
import jax
import jax.numpy as jnp
from jax.experimental import pallas as pl
from jax.experimental.pallas import tpu as pltpu

IMG_SIZE = 784   # K of fc1 (kept unpadded; full-dim BlockSpec is legal)
HIDDEN = 400
Z_SIZE = 20

# Lane-dense padded sizes (multiples of 128) for the hidden / latent widths.
HID_PAD = 512    # 400 -> 4 * 128
Z_PAD = 128      # 20  -> 1 * 128


def _round_up(x, m):
    return ((x + m - 1) // m) * m


def _choose_tile_b(B):
    """Pick the batch tile: 256-aligned, >=2 grid steps for large B, <=512."""
    if B >= 512:
        # At least two tiles so both v7x TensorCores get work; 256-aligned for
        # the v6e/v7x MXU; 512 rows amortize per-step pipeline overhead.
        return min(512, _round_up(pl.cdiv(B, 2), 256))
    # Small batch: a single tile, padded to a multiple of 8 sublanes.
    return max(8, _round_up(B, 8))


def encoder_kernel(x_ref, w1_ref, b1_ref, w2_ref, b2_ref, out_ref):
    # In-kernel f32 -> bf16 cast of the streaming operand (hides under the MXU,
    # avoids a separate XLA pad/convert HBM round trip in the wrapper).
    x = x_ref[...].astype(jnp.bfloat16)

    # fc1: Linear(784 -> 400) + ReLU   (bf16 operands, f32 accumulate)
    h = jnp.dot(x, w1_ref[...], preferred_element_type=jnp.float32)
    h = jnp.maximum(h + b1_ref[...], 0.0)            # bias + ReLU in f32

    # fc2: Linear(400 -> 20) + ReLU
    z = jnp.dot(h.astype(jnp.bfloat16), w2_ref[...],
                preferred_element_type=jnp.float32)
    z = jnp.maximum(z + b2_ref[...], 0.0)

    out_ref[...] = z.astype(out_ref.dtype)            # bf16 writeback


def _pad_to(a, shape):
    pads = [(0, t - s) for s, t in zip(a.shape, shape)]
    return jnp.pad(a, pads)


@jax.jit
def encoder_forward(x, w1, b1, w2, b2):
    """x: [B, 784] f32, w1: [784, 400], b1: [1, 400], w2: [400, 20], b2: [1, 20]
    -> [B, 20] f32 (weights stored transposed vs. PyTorch's [out, in])."""
    B = x.shape[0]
    tile_b = _choose_tile_b(B)
    n_tiles = pl.cdiv(B, tile_b)
    B_pad = n_tiles * tile_b

    # Batch-pad x only (stays f32; cast to bf16 inside the kernel).
    x_p = _pad_to(x, (B_pad, IMG_SIZE))
    # Resident operands: lane-dense zero padding + bf16 for the MXU.
    w1_p = _pad_to(w1, (IMG_SIZE, HID_PAD)).astype(jnp.bfloat16)
    w2_p = _pad_to(w2, (HID_PAD, Z_PAD)).astype(jnp.bfloat16)
    b1_p = _pad_to(b1, (1, HID_PAD))   # f32
    b2_p = _pad_to(b2, (1, Z_PAD))     # f32

    flops = 2 * B_pad * (IMG_SIZE * HID_PAD + HID_PAD * Z_PAD)
    bytes_accessed = (x_p.size * 4 + w1_p.size * 2 + w2_p.size * 2
                      + b1_p.size * 4 + b2_p.size * 4 + B_pad * Z_PAD * 2)

    out = pl.pallas_call(
        encoder_kernel,
        out_shape=jax.ShapeDtypeStruct((B_pad, Z_PAD), jnp.bfloat16),
        grid_spec=pl.GridSpec(
            grid=(n_tiles,),
            in_specs=[
                pl.BlockSpec((tile_b, IMG_SIZE), lambda i: (i, 0)),    # stream x (f32)
                pl.BlockSpec((IMG_SIZE, HID_PAD), lambda i: (0, 0)),   # w1 resident
                pl.BlockSpec((1, HID_PAD), lambda i: (0, 0)),          # b1 resident
                pl.BlockSpec((HID_PAD, Z_PAD), lambda i: (0, 0)),      # w2 resident
                pl.BlockSpec((1, Z_PAD), lambda i: (0, 0)),            # b2 resident
            ],
            out_specs=pl.BlockSpec((tile_b, Z_PAD), lambda i: (i, 0)),
        ),
        compiler_params=pltpu.CompilerParams(
            dimension_semantics=("parallel",),   # shard batch tiles across TCs (v7x)
            vmem_limit_bytes=32 * 1024 * 1024,   # plenty: <6 MiB used at tile_b=512
        ),
        cost_estimate=pl.CostEstimate(
            flops=flops, transcendentals=0, bytes_accessed=bytes_accessed),
    )(x_p, w1_p, b1_p, w2_p, b2_p)

    # Slice padded batch / padded z lanes back to the logical output, f32 out.
    return out[:B, :Z_SIZE].astype(jnp.float32)


def init_params(key):
    """Deterministic init mimicking nn.Linear default U(-1/sqrt(fan_in), +1/sqrt(fan_in))."""
    k1, k2, k3, k4 = jax.random.split(key, 4)
    s1 = 1.0 / jnp.sqrt(IMG_SIZE)
    s2 = 1.0 / jnp.sqrt(HIDDEN)
    # Stored transposed relative to PyTorch's [out, in] convention.
    w1 = jax.random.uniform(k1, (IMG_SIZE, HIDDEN), jnp.float32, -s1, s1)
    b1 = jax.random.uniform(k2, (1, HIDDEN), jnp.float32, -s1, s1)
    w2 = jax.random.uniform(k3, (HIDDEN, Z_SIZE), jnp.float32, -s2, s2)
    b2 = jax.random.uniform(k4, (1, Z_SIZE), jnp.float32, -s2, s2)
    return w1, b1, w2, b2


def reference_forward(x, w1, b1, w2, b2):
    """Pure-JAX reference with matching numerics (bf16 MXU inputs, f32 accumulate,
    bf16 output rounding)."""
    h = jnp.dot(x.astype(jnp.bfloat16), w1.astype(jnp.bfloat16),
                preferred_element_type=jnp.float32)
    h = jnp.maximum(h + b1, 0.0)
    z = jnp.dot(h.astype(jnp.bfloat16), w2.astype(jnp.bfloat16),
                preferred_element_type=jnp.float32)
    z = jnp.maximum(z + b2, 0.0)
    return z.astype(jnp.bfloat16).astype(jnp.float32)


if __name__ == "__main__":
    key = jax.random.PRNGKey(0)
    kx, kp = jax.random.split(key)

    batch = 8
    x = jax.random.uniform(kx, (batch, IMG_SIZE), jnp.float32)  # flattened 28x28 images
    w1, b1, w2, b2 = init_params(kp)

    out = encoder_forward(x, w1, b1, w2, b2)
    out = jax.block_until_ready(out)

    ref = reference_forward(x, w1, b1, w2, b2)
    assert out.shape == (batch, Z_SIZE)
    assert jnp.allclose(out, ref, atol=1e-2, rtol=1e-2), "mismatch vs pure-JAX reference"

    print("KERNEL_OK")
</pallas_src>

<mosaic_0001>
module attributes {stable_mosaic.version = 11 : i64} {
  func.func @encoder_kernel(%arg0: i32, %arg1: memref<8x784xf32, #tpu.memory_space<vmem>>, %arg2: memref<784x512xbf16, #tpu.memory_space<vmem>>, %arg3: memref<1x512xf32, #tpu.memory_space<vmem>>, %arg4: memref<512x128xbf16, #tpu.memory_space<vmem>>, %arg5: memref<1x128xf32, #tpu.memory_space<vmem>>, %arg6: memref<8x128xbf16, #tpu.memory_space<vmem>>) attributes {dimension_semantics = [#tpu.dimension_semantics<parallel>], iteration_bounds = array<i64: 1>, scalar_prefetch = 0 : i64, scratch_operands = 0 : i64, tpu.core_type = #tpu.core_type<tc>, window_params = [{transform_indices = @transform_0, window_bounds = array<i64: 8, 784>}, {pipeline_mode = #tpu.pipeline_mode<synchronous>, transform_indices = @transform_1, window_bounds = array<i64: 784, 512>}, {pipeline_mode = #tpu.pipeline_mode<synchronous>, transform_indices = @transform_2, window_bounds = array<i64: 1, 512>}, {pipeline_mode = #tpu.pipeline_mode<synchronous>, transform_indices = @transform_3, window_bounds = array<i64: 512, 128>}, {pipeline_mode = #tpu.pipeline_mode<synchronous>, transform_indices = @transform_4, window_bounds = array<i64: 1, 128>}, {transform_indices = @transform_5, window_bounds = array<i64: 8, 128>}]} {
    %c0 = arith.constant 0 : index
    %c0_0 = arith.constant 0 : index
    %0 = vector.load %arg1[%c0, %c0_0] : memref<8x784xf32, #tpu.memory_space<vmem>>, vector<8x784xf32>
    %1 = arith.truncf %0 : vector<8x784xf32> to vector<8x784xbf16>
    %c0_1 = arith.constant 0 : index
    %c0_2 = arith.constant 0 : index
    %2 = vector.load %arg2[%c0_1, %c0_2] : memref<784x512xbf16, #tpu.memory_space<vmem>>, vector<784x512xbf16>
    %cst = arith.constant dense<0.000000e+00> : vector<8x512xf32>
    %3 = tpu.matmul %1, %2, %cst {dimension_numbers = #tpu.dot_dimension_numbers<[1], [0], [0], [1], [0, 0, 1, 1], [], []>} : vector<8x784xbf16>, vector<784x512xbf16>, vector<8x512xf32> -> vector<8x512xf32>
    %c0_3 = arith.constant 0 : index
    %c0_4 = arith.constant 0 : index
    %4 = vector.load %arg3[%c0_3, %c0_4] : memref<1x512xf32, #tpu.memory_space<vmem>>, vector<1x512xf32>
    %5 = vector.broadcast %4 : vector<1x512xf32> to vector<8x512xf32>
    %6 = arith.addf %3, %5 : vector<8x512xf32>
    %cst_5 = arith.constant 0.000000e+00 : f32
    %7 = vector.broadcast %cst_5 : f32 to vector<8x512xf32>
    %8 = arith.maximumf %6, %7 : vector<8x512xf32>
    %9 = arith.truncf %8 : vector<8x512xf32> to vector<8x512xbf16>
    %c0_6 = arith.constant 0 : index
    %c0_7 = arith.constant 0 : index
    %10 = vector.load %arg4[%c0_6, %c0_7] : memref<512x128xbf16, #tpu.memory_space<vmem>>, vector<512x128xbf16>
    %cst_8 = arith.constant dense<0.000000e+00> : vector<8x128xf32>
    %11 = tpu.matmul %9, %10, %cst_8 {dimension_numbers = #tpu.dot_dimension_numbers<[1], [0], [0], [1], [0, 0, 1, 1], [], []>} : vector<8x512xbf16>, vector<512x128xbf16>, vector<8x128xf32> -> vector<8x128xf32>
    %c0_9 = arith.constant 0 : index
    %c0_10 = arith.constant 0 : index
    %12 = vector.load %arg5[%c0_9, %c0_10] : memref<1x128xf32, #tpu.memory_space<vmem>>, vector<1x128xf32>
    %13 = vector.broadcast %12 : vector<1x128xf32> to vector<8x128xf32>
    %14 = arith.addf %11, %13 : vector<8x128xf32>
    %cst_11 = arith.constant 0.000000e+00 : f32
    %15 = vector.broadcast %cst_11 : f32 to vector<8x128xf32>
    %16 = arith.maximumf %14, %15 : vector<8x128xf32>
    %17 = arith.truncf %16 : vector<8x128xf32> to vector<8x128xbf16>
    %c0_12 = arith.constant 0 : index
    %c0_13 = arith.constant 0 : index
    %18 = vector.load %arg6[%c0_12, %c0_13] : memref<8x128xbf16, #tpu.memory_space<vmem>>, vector<8x128xbf16>
    tpu.vector_store %arg6[%c0_12, %c0_13], %17 {strides = array<i32>} : memref<8x128xbf16, #tpu.memory_space<vmem>>, vector<8x128xbf16>,
    return
  }
  func.func @transform_0(%arg0: i32) -> (i32, i32) {
    %c0_i32 = arith.constant 0 : i32
    %c0_i32_0 = arith.constant 0 : i32
    return %arg0, %c0_i32 : i32, i32
  }
  func.func @transform_1(%arg0: i32) -> (i32, i32) {
    %c0_i32 = arith.constant 0 : i32
    %c0_i32_0 = arith.constant 0 : i32
    %c0_i32_1 = arith.constant 0 : i32
    return %c0_i32, %c0_i32_0 : i32, i32
  }
  func.func @transform_2(%arg0: i32) -> (i32, i32) {
    %c0_i32 = arith.constant 0 : i32
    %c0_i32_0 = arith.constant 0 : i32
    %c0_i32_1 = arith.constant 0 : i32
    return %c0_i32, %c0_i32_0 : i32, i32
  }
  func.func @transform_3(%arg0: i32) -> (i32, i32) {
    %c0_i32 = arith.constant 0 : i32
    %c0_i32_0 = arith.constant 0 : i32
    %c0_i32_1 = arith.constant 0 : i32
    return %c0_i32, %c0_i32_0 : i32, i32
  }
  func.func @transform_4(%arg0: i32) -> (i32, i32) {
    %c0_i32 = arith.constant 0 : i32
    %c0_i32_0 = arith.constant 0 : i32
    %c0_i32_1 = arith.constant 0 : i32
    return %c0_i32, %c0_i32_0 : i32, i32
  }
  func.func @transform_5(%arg0: i32) -> (i32, i32) {
    %c0_i32 = arith.constant 0 : i32
    %c0_i32_0 = arith.constant 0 : i32
    return %arg0, %c0_i32 : i32, i32
  }
}

</mosaic_0001>

<bundles_post_ra>
// kernel: encoder_forward.1
= control target key start
LH: loop header
LB: loop body
LE: loop exit
PB: predicated region body
PF: predicated region fallthrough
CT: control target
= control target key end

     0   :  { %vm1233_vm0 = vcmask 130048   ;;  %s3298_s1 = inlined_call_operand.vmem [shape: bf16[784,512], index: 1, kind: input, shape index: {}]   ;;  %s3299_s0 = inlined_call_operand.vmem [shape: f32[8,784], index: 0, kind: input, shape index: {}]   ;;  %s3300_s3 = inlined_call_operand.vmem [shape: bf16[512,128], index: 3, kind: input, shape index: {}]   ;;  %s3301_s2 = inlined_call_operand.vmem [shape: f32[1,512], index: 2, kind: input, shape index: {}]   ;;  %s3302_s4 = inlined_call_operand.vmem [shape: f32[1,128], index: 4, kind: input, shape index: {}]   ;;  %s3303_s5 = inlined_call_operand.vmem [shape: bf16[8,128], index: 5, kind: output, shape index: {}]  }
   0x1   :  { %v2227_v0 = vld [vmem:[%s3298_s1 + $0x4] ss:$16 sps:$4 sm:$0xff]   ;;  %v2229_v1 = vld [vmem:[%s3298_s1 + $0xc] ss:$16 sps:$4 sm:$0xff]   ;;  %v2231_v2 = vld [vmem:[%s3298_s1] ss:$16 sps:$4 sm:$0xff]  }
   0x2   :  { %1237 = vmatprep.subr.bf16.mxu0 %v2227_v0  ;;  %v2232_v3 = vld [vmem:[%s3298_s1 + $0x8] ss:$16 sps:$4 sm:$0xff]   ;;  %1401 = vmatprep.subr.bf16.mxu1 %v2229_v1  ;;  %v2233_v4 = vld [vmem:[%s3298_s1 + $0x24] ss:$16 sps:$4 sm:$0xff]   ;;  %v2235_v5 = vld [vmem:[%s3298_s1 + $0x2c] ss:$16 sps:$4 sm:$0xff]  }
   0x3   :  { %1238 = vmatpush1.bf16.msra.mxu0 %v2231_v2  ;;  %1402 = vmatpush1.bf16.msra.mxu1 %v2232_v3  ;;  %v2237_v6 = vld [vmem:[%s3298_s1 + $0x20] ss:$16 sps:$4 sm:$0xff]   ;;  %v2238_v7 = vld [vmem:[%s3298_s1 + $0x28] ss:$16 sps:$4 sm:$0xff]   ;;  %v2239_v8 = vld [vmem:[%s3298_s1 + $0x44] ss:$16 sps:$4 sm:$0xff]  }
   0x4   :  { %1239 = vmatprep.subr.bf16.mxu0 %v2233_v4  ;;  %1403 = vmatprep.subr.bf16.mxu1 %v2235_v5  ;;  %v2241_v9 = vld [vmem:[%s3298_s1 + $0x4c] ss:$16 sps:$4 sm:$0xff]   ;;  %v2243_v10 = vld [vmem:[%s3298_s1 + $0x40] ss:$16 sps:$4 sm:$0xff]   ;;  %v2244_v11 = vld [vmem:[%s3298_s1 + $0x48] ss:$16 sps:$4 sm:$0xff]  }
   0x5   :  { %v2245_v12 = vld [vmem:[%s3298_s1 + $0x64] ss:$16 sps:$4 sm:$0xff]   ;;  %v2247_v13 = vld [vmem:[%s3298_s1 + $0x6c] ss:$16 sps:$4 sm:$0xff]   ;;  %v2249_v14 = vld [vmem:[%s3298_s1 + $0x60] ss:$16 sps:$4 sm:$0xff]  }
   0x6   :  { %v2250_v15 = vld [vmem:[%s3298_s1 + $0x68] ss:$16 sps:$4 sm:$0xff]   ;;  %v2251_v16 = vld [vmem:[%s3298_s1 + $0x84] ss:$16 sps:$4 sm:$0xff]   ;;  %v2253_v17 = vld [vmem:[%s3298_s1 + $0x8c] ss:$16 sps:$4 sm:$0xff]  }
   0x7   :  { %1240 = vmatpush1.bf16.msra.mxu0 %v2237_v6  ;;  %1404 = vmatpush1.bf16.msra.mxu1 %v2238_v7  ;;  %v2255_v18 = vld [vmem:[%s3298_s1 + $0x80] ss:$16 sps:$4 sm:$0xff]   ;;  %v2256_v19 = vld [vmem:[%s3298_s1 + $0x88] ss:$16 sps:$4 sm:$0xff]   ;;  %v2257_v20 = vld [vmem:[%s3298_s1 + $0xa4] ss:$16 sps:$4 sm:$0xff]  }
   0x8   :  { %1241 = vmatprep.subr.bf16.mxu0 %v2239_v8  ;;  %1405 = vmatprep.subr.bf16.mxu1 %v2241_v9  ;;  %v2259_v21 = vld [vmem:[%s3298_s1 + $0xac] ss:$16 sps:$4 sm:$0xff]   ;;  %v2261_v22 = vld [vmem:[%s3298_s1 + $0xa0] ss:$16 sps:$4 sm:$0xff]   ;;  %v2262_v23 = vld [vmem:[%s3298_s1 + $0xa8] ss:$16 sps:$4 sm:$0xff]  }
   0x9   :  { %v2263_v24 = vld [vmem:[%s3298_s1 + $0xc4] ss:$16 sps:$4 sm:$0xff]   ;;  %v2265_v25 = vld [vmem:[%s3298_s1 + $0xcc] ss:$16 sps:$4 sm:$0xff]   ;;  %v2267_v26 = vld [vmem:[%s3298_s1 + $0xc0] ss:$16 sps:$4 sm:$0xff]  }
   0xa   :  { %v2268_v27 = vld [vmem:[%s3298_s1 + $0xc8] ss:$16 sps:$4 sm:$0xff]   ;;  %v2269_v28 = vld [vmem:[%s3298_s1 + $0xe4] ss:$16 sps:$4 sm:$0xff]   ;;  %v2271_v29 = vld [vmem:[%s3298_s1 + $0xec] ss:$16 sps:$4 sm:$0xff]  }
   0xb   :  { %1242 = vmatpush1.bf16.msra.mxu0 %v2243_v10  ;;  %1406 = vmatpush1.bf16.msra.mxu1 %v2244_v11  ;;  %v2273_v30 = vld [vmem:[%s3298_s1 + $0xe0] ss:$16 sps:$4 sm:$0xff]   ;;  %v2274_v31 = vld [vmem:[%s3298_s1 + $0xe8] ss:$16 sps:$4 sm:$0xff]   ;;  %v2275_v32 = vld [vmem:[%s3298_s1 + $0x104] ss:$16 sps:$4 sm:$0xff]  }
   0xc   :  { %1243 = vmatprep.subr.bf16.mxu0 %v2245_v12  ;;  %1407 = vmatprep.subr.bf16.mxu1 %v2247_v13  ;;  %v2277_v33 = vld [vmem:[%s3298_s1 + $0x10c] ss:$16 sps:$4 sm:$0xff]   ;;  %v2279_v34 = vld [vmem:[%s3298_s1 + $0x100] ss:$16 sps:$4 sm:$0xff]   ;;  %v2280_v35 = vld [vmem:[%s3298_s1 + $0x108] ss:$16 sps:$4 sm:$0xff]  }
   0xd   :  { %v2281_v36 = vld [vmem:[%s3298_s1 + $0x124] ss:$16 sps:$4 sm:$0xff]   ;;  %v2283_v37 = vld [vmem:[%s3298_s1 + $0x12c] ss:$16 sps:$4 sm:$0xff]   ;;  %v2285_v38 = vld [vmem:[%s3298_s1 + $0x120] ss:$16 sps:$4 sm:$0xff]  }
   0xe   :  { %v2286_v39 = vld [vmem:[%s3298_s1 + $0x128] ss:$16 sps:$4 sm:$0xff]   ;;  %v2287_v40 = vld [vmem:[%s3298_s1 + $0x144] ss:$16 sps:$4 sm:$0xff]   ;;  %v2289_v41 = vld [vmem:[%s3298_s1 + $0x14c] ss:$16 sps:$4 sm:$0xff]  }
   0xf   :  { %1244 = vmatpush1.bf16.msra.mxu0 %v2249_v14  ;;  %1408 = vmatpush1.bf16.msra.mxu1 %v2250_v15  ;;  %v2291_v42 = vld [vmem:[%s3298_s1 + $0x140] ss:$16 sps:$4 sm:$0xff]   ;;  %v2292_v43 = vld [vmem:[%s3298_s1 + $0x148] ss:$16 sps:$4 sm:$0xff]   ;;  %v2293_v44 = vld [vmem:[%s3298_s1 + $0x164] ss:$16 sps:$4 sm:$0xff]  }
  0x10   :  { %1245 = vmatprep.subr.bf16.mxu0 %v2251_v16  ;;  %1409 = vmatprep.subr.bf16.mxu1 %v2253_v17  ;;  %v2295_v45 = vld [vmem:[%s3298_s1 + $0x16c] ss:$16 sps:$4 sm:$0xff]   ;;  %v2297_v47 = vld [vmem:[%s3298_s1 + $0x160] ss:$16 sps:$4 sm:$0xff]   ;;  %v2298_v49 = vld [vmem:[%s3298_s1 + $0x168] ss:$16 sps:$4 sm:$0xff]  }
  0x11   :  { %v22_v46 = vld [vmem:[%s3299_s0 + $0x8] sm:$0xff]  ;;  %v2299_v50 = vld [vmem:[%s3298_s1 + $0x184] ss:$16 sps:$4 sm:$0xff]   ;;  %v2303_v52 = vld [vmem:[%s3298_s1 + $0x180] ss:$16 sps:$4 sm:$0xff]  }
  0x12   :  { %v29_v48 = vpack.c.bf16 %v22_v46, %v22_v46  ;;  %v2301_v51 = vld [vmem:[%s3298_s1 + $0x18c] ss:$16 sps:$4 sm:$0xff]   ;;  %v2304_v53 = vld [vmem:[%s3298_s1 + $0x188] ss:$16 sps:$4 sm:$0xff]   ;;  %v2305_v54 = vld [vmem:[%s3298_s1 + $0x1a4] ss:$16 sps:$4 sm:$0xff]  }
  0x13   :  { %1246 = vmatpush1.bf16.msra.mxu0 %v2255_v18  ;;  %1410 = vmatpush1.bf16.msra.mxu1 %v2256_v19  ;;  %v2307_v55 = vld [vmem:[%s3298_s1 + $0x1ac] ss:$16 sps:$4 sm:$0xff]   ;;  %v2309_v56 = vld [vmem:[%s3298_s1 + $0x1a0] ss:$16 sps:$4 sm:$0xff]   ;;  %v2310_v57 = vld [vmem:[%s3298_s1 + $0x1a8] ss:$16 sps:$4 sm:$0xff]  }
  0x14   :  { %1247 = vmatprep.subr.bf16.mxu0 %v2257_v20  ;;  %1411 = vmatprep.subr.bf16.mxu1 %v2259_v21  ;;  %v2311_v58 = vld [vmem:[%s3298_s1 + $0x1c4] ss:$16 sps:$4 sm:$0xff]   ;;  %v2313_v59 = vld [vmem:[%s3298_s1 + $0x1cc] ss:$16 sps:$4 sm:$0xff]   ;;  %v2315_v60 = vld [vmem:[%s3298_s1 + $0x1c0] ss:$16 sps:$4 sm:$0xff]  }
  0x15   :  { %1269 = vmatprep.mubr.bf16.mxu0 %v29_v48  ;;  %1433 = vmatprep.mubr.bf16.mxu1 %v29_v48  ;;  %v2316_v61 = vld [vmem:[%s3298_s1 + $0x1c8] ss:$16 sps:$4 sm:$0xff]   ;;  %v2317_v62 = vld [vmem:[%s3298_s1 + $0x1e4] ss:$16 sps:$4 sm:$0xff]   ;;  %v2319_v63 = vld [vmem:[%s3298_s1 + $0x1ec] ss:$16 sps:$4 sm:$0xff]  }
  0x16   :  { %v2321_v0 = vld [vmem:[%s3298_s1 + $0x1e0] ss:$16 sps:$4 sm:$0xff]   ;;  %v2322_v1 = vld [vmem:[%s3298_s1 + $0x1e8] ss:$16 sps:$4 sm:$0xff]   ;;  %v2325_v3 = vld [vmem:[%s3298_s1 + $0x204] ss:$16 sps:$4 sm:$0xff]  }
  0x17   :  { %1248 = vmatpush1.bf16.msra.mxu0 %v2261_v22  ;;  %1412 = vmatpush1.bf16.msra.mxu1 %v2262_v23  ;;  %v21_v2 = vld [vmem:[%s3299_s0] sm:$0xff]  ;;  %v2328_v4 = vld [vmem:[%s3298_s1 + $0x20c] ss:$16 sps:$4 sm:$0xff]   ;;  %v2326_v7 = vld [vmem:[%s3298_s1 + $0x208] ss:$16 sps:$4 sm:$0xff]  }
  0x18   :  { %1249 = vmatprep.subr.bf16.mxu0 %v2263_v24  ;;  %1413 = vmatprep.subr.bf16.mxu1 %v2265_v25  ;;  %v28_v5 = vpack.c.bf16 %v21_v2, %v21_v2  ;;  %v2323_v6 = vld [vmem:[%s3298_s1 + $0x200] ss:$16 sps:$4 sm:$0xff]   ;;  %v2331_v8 = vld [vmem:[%s3298_s1 + $0x224] ss:$16 sps:$4 sm:$0xff]   ;;  %v2334_v9 = vld [vmem:[%s3298_s1 + $0x22c] ss:$16 sps:$4 sm:$0xff]  }
  0x19   :  { %v2329_v10 = vld [vmem:[%s3298_s1 + $0x220] ss:$16 sps:$4 sm:$0xff]   ;;  %v2332_v11 = vld [vmem:[%s3298_s1 + $0x228] ss:$16 sps:$4 sm:$0xff]   ;;  %v2337_v12 = vld [vmem:[%s3298_s1 + $0x244] ss:$16 sps:$4 sm:$0xff]  }
  0x1a   :  { %v2340_v13 = vld [vmem:[%s3298_s1 + $0x24c] ss:$16 sps:$4 sm:$0xff]   ;;  %v2335_v14 = vld [vmem:[%s3298_s1 + $0x240] ss:$16 sps:$4 sm:$0xff]   ;;  %v2338_v15 = vld [vmem:[%s3298_s1 + $0x248] ss:$16 sps:$4 sm:$0xff]  }
  0x1b   :  { %1250 = vmatpush1.bf16.msra.mxu0 %v2267_v26  ;;  %1414 = vmatpush1.bf16.msra.mxu1 %v2268_v27  ;;  %v2343_v16 = vld [vmem:[%s3298_s1 + $0x264] ss:$16 sps:$4 sm:$0xff]   ;;  %v2346_v17 = vld [vmem:[%s3298_s1 + $0x26c] ss:$16 sps:$4 sm:$0xff]   ;;  %v2341_v18 = vld [vmem:[%s3298_s1 + $0x260] ss:$16 sps:$4 sm:$0xff]  }
  0x1c   :  { %1251 = vmatprep.subr.bf16.mxu0 %v2269_v28  ;;  %1415 = vmatprep.subr.bf16.mxu1 %v2271_v29  ;;  %v2344_v19 = vld [vmem:[%s3298_s1 + $0x268] ss:$16 sps:$4 sm:$0xff]   ;;  %v2349_v20 = vld [vmem:[%s3298_s1 + $0x284] ss:$16 sps:$4 sm:$0xff]   ;;  %v2352_v21 = vld [vmem:[%s3298_s1 + $0x28c] ss:$16 sps:$4 sm:$0xff]  }
  0x1d   :  { %v2347_v22 = vld [vmem:[%s3298_s1 + $0x280] ss:$16 sps:$4 sm:$0xff]   ;;  %v2350_v23 = vld [vmem:[%s3298_s1 + $0x288] ss:$16 sps:$4 sm:$0xff]   ;;  %v2355_v24 = vld [vmem:[%s3298_s1 + $0x2a4] ss:$16 sps:$4 sm:$0xff]  }
  0x1e   :  { %v2358_v25 = vld [vmem:[%s3298_s1 + $0x2ac] ss:$16 sps:$4 sm:$0xff]   ;;  %v2353_v26 = vld [vmem:[%s3298_s1 + $0x2a0] ss:$16 sps:$4 sm:$0xff]   ;;  %v2356_v27 = vld [vmem:[%s3298_s1 + $0x2a8] ss:$16 sps:$4 sm:$0xff]  }
  0x1f   :  { %1252 = vmatpush1.bf16.msra.mxu0 %v2273_v30  ;;  %1416 = vmatpush1.bf16.msra.mxu1 %v2274_v31  ;;  %v2361_v28 = vld [vmem:[%s3298_s1 + $0x2c4] ss:$16 sps:$4 sm:$0xff]   ;;  %v2364_v29 = vld [vmem:[%s3298_s1 + $0x2cc] ss:$16 sps:$4 sm:$0xff]   ;;  %v2359_v31 = vld [vmem:[%s3298_s1 + $0x2c0] ss:$16 sps:$4 sm:$0xff]  }
  0x20   :  { %1253 = vmatprep.subr.bf16.mxu0 %v2275_v32  ;;  %1417 = vmatprep.subr.bf16.mxu1 %v2277_v33  ;;  %v24_v30 = vld [vmem:[%s3299_s0 + $0x18] sm:$0xff]  ;;  %v2385_v46 = vld [vmem:[%s3298_s1 + $0x344] ss:$16 sps:$4 sm:$0xff]   ;;  %v2383_v48 = vld [vmem:[%s3298_s1 + $0x340] ss:$16 sps:$4 sm:$0xff]  }
  0x21   :  { %v31_v32 = vpack.c.bf16 %v24_v30, %v24_v30  ;;  %v2362_v33 = vld [vmem:[%s3298_s1 + $0x2c8] ss:$16 sps:$4 sm:$0xff]   ;;  %v2415_v2 = vld [vmem:[%s3298_s1 + $0x3e4] ss:$16 sps:$4 sm:$0xff]  }
  0x22   :  { %v2451_v30 = vld [vmem:[%s3298_s1 + $0x4a4] ss:$16 sps:$4 sm:$0xff]  }
  0x23   :  { %1254 = vmatpush1.bf16.msra.mxu0 %v2279_v34  ;;  %1418 = vmatpush1.bf16.msra.mxu1 %v2280_v35  ;;  %v2367_v34 = vld [vmem:[%s3298_s1 + $0x2e4] ss:$16 sps:$4 sm:$0xff]   ;;  %v2370_v35 = vld [vmem:[%s3298_s1 + $0x2ec] ss:$16 sps:$4 sm:$0xff]  }
  0x24   :  { %1255 = vmatprep.subr.bf16.mxu0 %v2281_v36  ;;  %1419 = vmatprep.subr.bf16.mxu1 %v2283_v37  ;;  %v2365_v36 = vld [vmem:[%s3298_s1 + $0x2e0] ss:$16 sps:$4 sm:$0xff]   ;;  %v2368_v37 = vld [vmem:[%s3298_s1 + $0x2e8] ss:$16 sps:$4 sm:$0xff]  }
  0x27   :  { %1256 = vmatpush1.bf16.msra.mxu0 %v2285_v38  ;;  %1420 = vmatpush1.bf16.msra.mxu1 %v2286_v39  ;;  %v2373_v38 = vld [vmem:[%s3298_s1 + $0x304] ss:$16 sps:$4 sm:$0xff]   ;;  %v2376_v39 = vld [vmem:[%s3298_s1 + $0x30c] ss:$16 sps:$4 sm:$0xff]  }
  0x28   :  { %1257 = vmatprep.subr.bf16.mxu0 %v2287_v40  ;;  %1421 = vmatprep.subr.bf16.mxu1 %v2289_v41  ;;  %v2371_v40 = vld [vmem:[%s3298_s1 + $0x300] ss:$16 sps:$4 sm:$0xff]   ;;  %v2374_v41 = vld [vmem:[%s3298_s1 + $0x308] ss:$16 sps:$4 sm:$0xff]  }
  0x2b   :  { %1258 = vmatpush1.bf16.msra.mxu0 %v2291_v42  ;;  %1422 = vmatpush1.bf16.msra.mxu1 %v2292_v43  ;;  %v2379_v42 = vld [vmem:[%s3298_s1 + $0x324] ss:$16 sps:$4 sm:$0xff]   ;;  %v2382_v43 = vld [vmem:[%s3298_s1 + $0x32c] ss:$16 sps:$4 sm:$0xff]  }
  0x2c   :  { %1259 = vmatprep.subr.bf16.mxu0 %v2293_v44  ;;  %1423 = vmatprep.subr.bf16.mxu1 %v2295_v45  ;;  %v2377_v44 = vld [vmem:[%s3298_s1 + $0x320] ss:$16 sps:$4 sm:$0xff]   ;;  %v2380_v45 = vld [vmem:[%s3298_s1 + $0x328] ss:$16 sps:$4 sm:$0xff]  }
  0x2f   :  { %1260 = vmatpush1.bf16.msra.mxu0 %v2297_v47  ;;  %1424 = vmatpush1.bf16.msra.mxu1 %v2298_v49  ;;  %v2388_v47 = vld [vmem:[%s3298_s1 + $0x34c] ss:$16 sps:$4 sm:$0xff]   ;;  %v2386_v49 = vld [vmem:[%s3298_s1 + $0x348] ss:$16 sps:$4 sm:$0xff]  }
  0x30   :  { %1261 = vmatprep.subr.bf16.mxu0 %v2299_v50  ;;  %1425 = vmatprep.subr.bf16.mxu1 %v2301_v51  ;;  %v2391_v50 = vld [vmem:[%s3298_s1 + $0x364] ss:$16 sps:$4 sm:$0xff]   ;;  %v2394_v51 = vld [vmem:[%s3298_s1 + $0x36c] ss:$16 sps:$4 sm:$0xff]  }
  0x33   :  { %1262 = vmatpush1.bf16.msra.mxu0 %v2303_v52  ;;  %1426 = vmatpush1.bf16.msra.mxu1 %v2304_v53  ;;  %v2389_v52 = vld [vmem:[%s3298_s1 + $0x360] ss:$16 sps:$4 sm:$0xff]   ;;  %v2392_v53 = vld [vmem:[%s3298_s1 + $0x368] ss:$16 sps:$4 sm:$0xff]  }
  0x34   :  { %1263 = vmatprep.subr.bf16.mxu0 %v2305_v54  ;;  %1427 = vmatprep.subr.bf16.mxu1 %v2307_v55  ;;  %v2397_v54 = vld [vmem:[%s3298_s1 + $0x384] ss:$16 sps:$4 sm:$0xff]   ;;  %v2400_v55 = vld [vmem:[%s3298_s1 + $0x38c] ss:$16 sps:$4 sm:$0xff]  }
  0x37   :  { %1264 = vmatpush1.bf16.msra.mxu0 %v2309_v56  ;;  %1428 = vmatpush1.bf16.msra.mxu1 %v2310_v57  ;;  %v2395_v56 = vld [vmem:[%s3298_s1 + $0x380] ss:$16 sps:$4 sm:$0xff]   ;;  %v2398_v57 = vld [vmem:[%s3298_s1 + $0x388] ss:$16 sps:$4 sm:$0xff]  }
  0x38   :  { %1265 = vmatprep.subr.bf16.mxu0 %v2311_v58  ;;  %1429 = vmatprep.subr.bf16.mxu1 %v2313_v59  ;;  %v2403_v58 = vld [vmem:[%s3298_s1 + $0x3a4] ss:$16 sps:$4 sm:$0xff]   ;;  %v2406_v59 = vld [vmem:[%s3298_s1 + $0x3ac] ss:$16 sps:$4 sm:$0xff]  }
  0x3b   :  { %1266 = vmatpush1.bf16.msra.mxu0 %v2315_v60  ;;  %1430 = vmatpush1.bf16.msra.mxu1 %v2316_v61  ;;  %v2401_v60 = vld [vmem:[%s3298_s1 + $0x3a0] ss:$16 sps:$4 sm:$0xff]   ;;  %v2404_v61 = vld [vmem:[%s3298_s1 + $0x3a8] ss:$16 sps:$4 sm:$0xff]  }
  0x3c   :  { %1267 = vmatprep.subr.bf16.mxu0 %v2317_v62  ;;  %1431 = vmatprep.subr.bf16.mxu1 %v2319_v63  ;;  %v2409_v62 = vld [vmem:[%s3298_s1 + $0x3c4] ss:$16 sps:$4 sm:$0xff]   ;;  %v2412_v63 = vld [vmem:[%s3298_s1 + $0x3cc] ss:$16 sps:$4 sm:$0xff]  }
  0x3f   :  { %1268 = vmatpush1.bf16.msra.mxu0 %v2321_v0  ;;  %1432 = vmatpush1.bf16.msra.mxu1 %v2322_v1  ;;  %v2407_v0 = vld [vmem:[%s3298_s1 + $0x3c0] ss:$16 sps:$4 sm:$0xff]   ;;  %v2410_v1 = vld [vmem:[%s3298_s1 + $0x3c8] ss:$16 sps:$4 sm:$0xff]  }
  0x40   :  { %1278 = vmatprep.subr.bf16.mxu0 %v2325_v3  ;;  %1442 = vmatprep.subr.bf16.mxu1 %v2328_v4  ;;  %v2418_v3 = vld [vmem:[%s3298_s1 + $0x3ec] ss:$16 sps:$4 sm:$0xff]   ;;  %v2413_v4 = vld [vmem:[%s3298_s1 + $0x3e0] ss:$16 sps:$4 sm:$0xff]  }
  0x42   :  { %1270 = vmatmul.mubr.bf16.vlgmr.msra.gmra.mrb[0].mxu0 %v28_v5  ;;  %1434 = vmatmul.mubr.bf16.vlgmr.msra.gmra.mrb[0].mxu1 %v28_v5  ;;  %v2416_v5 = vld [vmem:[%s3298_s1 + $0x3e8] ss:$16 sps:$4 sm:$0xff]  }
  0x43   :  { %1279 = vmatpush1.bf16.msra.mxu0 %v2323_v6  ;;  %1443 = vmatpush1.bf16.msra.mxu1 %v2326_v7  ;;  %v2421_v6 = vld [vmem:[%s3298_s1 + $0x404] ss:$16 sps:$4 sm:$0xff]  }
  0x44   :  { %1280 = vmatprep.subr.bf16.mxu0 %v2331_v8  ;;  %1444 = vmatprep.subr.bf16.mxu1 %v2334_v9  ;;  %v23_v7 = vld [vmem:[%s3299_s0 + $0x10] sm:$0xff]  ;;  %v2424_v8 = vld [vmem:[%s3298_s1 + $0x40c] ss:$16 sps:$4 sm:$0xff]  }
  0x45   :  { %1310 = vmatprep.mubr.bf16.mxu0 %v31_v32  ;;  %1474 = vmatprep.mubr.bf16.mxu1 %v31_v32  ;;  %v2419_v9 = vld [vmem:[%s3298_s1 + $0x400] ss:$16 sps:$4 sm:$0xff]  }
  0x46   :  { %v2449_v32 = vld [vmem:[%s3298_s1 + $0x4a0] ss:$16 sps:$4 sm:$0xff]  }
  0x47   :  { %1281 = vmatpush1.bf16.msra.mxu0 %v2329_v10  ;;  %1445 = vmatpush1.bf16.msra.mxu1 %v2332_v11  ;;  %v30_v10 = vpack.c.bf16 %v23_v7, %v23_v7  ;;  %v2422_v11 = vld [vmem:[%s3298_s1 + $0x408] ss:$16 sps:$4 sm:$0xff]   ;;  %v2514_v7 = vld [vmem:[%s3298_s1 + $0x5ec] ss:$16 sps:$4 sm:$0xff]  }
  0x48   :  { %1282 = vmatprep.subr.bf16.mxu0 %v2337_v12  ;;  %1446 = vmatprep.subr.bf16.mxu1 %v2340_v13  ;;  %v2427_v12 = vld [vmem:[%s3298_s1 + $0x424] ss:$16 sps:$4 sm:$0xff]   ;;  %v2430_v13 = vld [vmem:[%s3298_s1 + $0x42c] ss:$16 sps:$4 sm:$0xff]  }
  0x4b   :  { %1283 = vmatpush1.bf16.msra.mxu0 %v2335_v14  ;;  %1447 = vmatpush1.bf16.msra.mxu1 %v2338_v15  ;;  %v26_v14 = vld [vmem:[%s3299_s0 + $0x28] sm:$0xff] }
  0x4c   :  { %1284 = vmatprep.subr.bf16.mxu0 %v2343_v16  ;;  %1448 = vmatprep.subr.bf16.mxu1 %v2346_v17  ;;  %v33_v15 = vpack.c.bf16 %v26_v14, %v26_v14  ;;  %v2425_v16 = vld [vmem:[%s3298_s1 + $0x420] ss:$16 sps:$4 sm:$0xff]   ;;  %v2428_v17 = vld [vmem:[%s3298_s1 + $0x428] ss:$16 sps:$4 sm:$0xff]  }
  0x4d   :  { %v2515_v14 = vld [vmem:[%s3298_s1 + $0x600] ss:$16 sps:$4 sm:$0xff]  }
  0x4f   :  { %1285 = vmatpush1.bf16.msra.mxu0 %v2341_v18  ;;  %1449 = vmatpush1.bf16.msra.mxu1 %v2344_v19  ;;  %v2433_v18 = vld [vmem:[%s3298_s1 + $0x444] ss:$16 sps:$4 sm:$0xff]   ;;  %v2436_v19 = vld [vmem:[%s3298_s1 + $0x44c] ss:$16 sps:$4 sm:$0xff]  }
  0x50   :  { %1286 = vmatprep.subr.bf16.mxu0 %v2349_v20  ;;  %1450 = vmatprep.subr.bf16.mxu1 %v2352_v21  ;;  %v2431_v20 = vld [vmem:[%s3298_s1 + $0x440] ss:$16 sps:$4 sm:$0xff]   ;;  %v2434_v21 = vld [vmem:[%s3298_s1 + $0x448] ss:$16 sps:$4 sm:$0xff]  }
  0x53   :  { %1287 = vmatpush1.bf16.msra.mxu0 %v2347_v22  ;;  %1451 = vmatpush1.bf16.msra.mxu1 %v2350_v23  ;;  %v2439_v22 = vld [vmem:[%s3298_s1 + $0x464] ss:$16 sps:$4 sm:$0xff]   ;;  %v2442_v23 = vld [vmem:[%s3298_s1 + $0x46c] ss:$16 sps:$4 sm:$0xff]  }
  0x54   :  { %1288 = vmatprep.subr.bf16.mxu0 %v2355_v24  ;;  %1452 = vmatprep.subr.bf16.mxu1 %v2358_v25  ;;  %v2437_v24 = vld [vmem:[%s3298_s1 + $0x460] ss:$16 sps:$4 sm:$0xff]   ;;  %v2440_v25 = vld [vmem:[%s3298_s1 + $0x468] ss:$16 sps:$4 sm:$0xff]  }
  0x57   :  { %1289 = vmatpush1.bf16.msra.mxu0 %v2353_v26  ;;  %1453 = vmatpush1.bf16.msra.mxu1 %v2356_v27  ;;  %v2445_v26 = vld [vmem:[%s3298_s1 + $0x484] ss:$16 sps:$4 sm:$0xff]   ;;  %v2448_v27 = vld [vmem:[%s3298_s1 + $0x48c] ss:$16 sps:$4 sm:$0xff]  }
  0x58   :  { %1290 = vmatprep.subr.bf16.mxu0 %v2361_v28  ;;  %1454 = vmatprep.subr.bf16.mxu1 %v2364_v29  ;;  %v2443_v28 = vld [vmem:[%s3298_s1 + $0x480] ss:$16 sps:$4 sm:$0xff]   ;;  %v2446_v29 = vld [vmem:[%s3298_s1 + $0x488] ss:$16 sps:$4 sm:$0xff]  }
  0x5b   :  { %1291 = vmatpush1.bf16.msra.mxu0 %v2359_v31  ;;  %1455 = vmatpush1.bf16.msra.mxu1 %v2362_v33  ;;  %v2454_v31 = vld [vmem:[%s3298_s1 + $0x4ac] ss:$16 sps:$4 sm:$0xff]   ;;  %v2452_v33 = vld [vmem:[%s3298_s1 + $0x4a8] ss:$16 sps:$4 sm:$0xff]  }
  0x5c   :  { %1292 = vmatprep.subr.bf16.mxu0 %v2367_v34  ;;  %1456 = vmatprep.subr.bf16.mxu1 %v2370_v35  ;;  %v2457_v34 = vld [vmem:[%s3298_s1 + $0x4c4] ss:$16 sps:$4 sm:$0xff]   ;;  %v2460_v35 = vld [vmem:[%s3298_s1 + $0x4cc] ss:$16 sps:$4 sm:$0xff]  }
  0x5f   :  { %1293 = vmatpush1.bf16.msra.mxu0 %v2365_v36  ;;  %1457 = vmatpush1.bf16.msra.mxu1 %v2368_v37  ;;  %v2455_v36 = vld [vmem:[%s3298_s1 + $0x4c0] ss:$16 sps:$4 sm:$0xff]   ;;  %v2458_v37 = vld [vmem:[%s3298_s1 + $0x4c8] ss:$16 sps:$4 sm:$0xff]  }
  0x60   :  { %1294 = vmatprep.subr.bf16.mxu0 %v2373_v38  ;;  %1458 = vmatprep.subr.bf16.mxu1 %v2376_v39  ;;  %v2463_v38 = vld [vmem:[%s3298_s1 + $0x4e4] ss:$16 sps:$4 sm:$0xff]   ;;  %v2466_v39 = vld [vmem:[%s3298_s1 + $0x4ec] ss:$16 sps:$4 sm:$0xff]  }
  0x63   :  { %1295 = vmatpush1.bf16.msra.mxu0 %v2371_v40  ;;  %1459 = vmatpush1.bf16.msra.mxu1 %v2374_v41  ;;  %v2461_v40 = vld [vmem:[%s3298_s1 + $0x4e0] ss:$16 sps:$4 sm:$0xff]   ;;  %v2464_v41 = vld [vmem:[%s3298_s1 + $0x4e8] ss:$16 sps:$4 sm:$0xff]  }
  0x64   :  { %1296 = vmatprep.subr.bf16.mxu0 %v2379_v42  ;;  %1460 = vmatprep.subr.bf16.mxu1 %v2382_v43  ;;  %v2469_v42 = vld [vmem:[%s3298_s1 + $0x504] ss:$16 sps:$4 sm:$0xff]   ;;  %v2472_v43 = vld [vmem:[%s3298_s1 + $0x50c] ss:$16 sps:$4 sm:$0xff]  }
  0x67   :  { %1297 = vmatpush1.bf16.msra.mxu0 %v2377_v44  ;;  %1461 = vmatpush1.bf16.msra.mxu1 %v2380_v45  ;;  %v2467_v44 = vld [vmem:[%s3298_s1 + $0x500] ss:$16 sps:$4 sm:$0xff]   ;;  %v2470_v45 = vld [vmem:[%s3298_s1 + $0x508] ss:$16 sps:$4 sm:$0xff]  }
  0x68   :  { %1298 = vmatprep.subr.bf16.mxu0 %v2385_v46  ;;  %1462 = vmatprep.subr.bf16.mxu1 %v2388_v47  ;;  %v2475_v46 = vld [vmem:[%s3298_s1 + $0x524] ss:$16 sps:$4 sm:$0xff]   ;;  %v2478_v47 = vld [vmem:[%s3298_s1 + $0x52c] ss:$16 sps:$4 sm:$0xff]  }
  0x6b   :  { %1299 = vmatpush1.bf16.msra.mxu0 %v2383_v48  ;;  %1463 = vmatpush1.bf16.msra.mxu1 %v2386_v49  ;;  %v2473_v48 = vld [vmem:[%s3298_s1 + $0x520] ss:$16 sps:$4 sm:$0xff]   ;;  %v2476_v49 = vld [vmem:[%s3298_s1 + $0x528] ss:$16 sps:$4 sm:$0xff]  }
  0x6c   :  { %1300 = vmatprep.subr.bf16.mxu0 %v2391_v50  ;;  %1464 = vmatprep.subr.bf16.mxu1 %v2394_v51  ;;  %v2481_v50 = vld [vmem:[%s3298_s1 + $0x544] ss:$16 sps:$4 sm:$0xff]   ;;  %v2484_v51 = vld [vmem:[%s3298_s1 + $0x54c] ss:$16 sps:$4 sm:$0xff]  }
  0x6f   :  { %1301 = vmatpush1.bf16.msra.mxu0 %v2389_v52  ;;  %1465 = vmatpush1.bf16.msra.mxu1 %v2392_v53  ;;  %v2479_v52 = vld [vmem:[%s3298_s1 + $0x540] ss:$16 sps:$4 sm:$0xff]   ;;  %v2482_v53 = vld [vmem:[%s3298_s1 + $0x548] ss:$16 sps:$4 sm:$0xff]  }
  0x70   :  { %1302 = vmatprep.subr.bf16.mxu0 %v2397_v54  ;;  %1466 = vmatprep.subr.bf16.mxu1 %v2400_v55  ;;  %v2487_v54 = vld [vmem:[%s3298_s1 + $0x564] ss:$16 sps:$4 sm:$0xff]   ;;  %v2490_v55 = vld [vmem:[%s3298_s1 + $0x56c] ss:$16 sps:$4 sm:$0xff]  }
  0x73   :  { %1303 = vmatpush1.bf16.msra.mxu0 %v2395_v56  ;;  %1467 = vmatpush1.bf16.msra.mxu1 %v2398_v57  ;;  %v2485_v56 = vld [vmem:[%s3298_s1 + $0x560] ss:$16 sps:$4 sm:$0xff]   ;;  %v2488_v57 = vld [vmem:[%s3298_s1 + $0x568] ss:$16 sps:$4 sm:$0xff]  }
  0x74   :  { %1304 = vmatprep.subr.bf16.mxu0 %v2403_v58  ;;  %1468 = vmatprep.subr.bf16.mxu1 %v2406_v59  ;;  %v2493_v58 = vld [vmem:[%s3298_s1 + $0x584] ss:$16 sps:$4 sm:$0xff]   ;;  %v2496_v59 = vld [vmem:[%s3298_s1 + $0x58c] ss:$16 sps:$4 sm:$0xff]  }
  0x77   :  { %1305 = vmatpush1.bf16.msra.mxu0 %v2401_v60  ;;  %1469 = vmatpush1.bf16.msra.mxu1 %v2404_v61  ;;  %v2491_v60 = vld [vmem:[%s3298_s1 + $0x580] ss:$16 sps:$4 sm:$0xff]   ;;  %v2494_v61 = vld [vmem:[%s3298_s1 + $0x588] ss:$16 sps:$4 sm:$0xff]  }
  0x78   :  { %1306 = vmatprep.subr.bf16.mxu0 %v2409_v62  ;;  %1470 = vmatprep.subr.bf16.mxu1 %v2412_v63  ;;  %v2499_v62 = vld [vmem:[%s3298_s1 + $0x5a4] ss:$16 sps:$4 sm:$0xff]   ;;  %v2502_v63 = vld [vmem:[%s3298_s1 + $0x5ac] ss:$16 sps:$4 sm:$0xff]  }
  0x7b   :  { %1307 = vmatpush1.bf16.msra.mxu0 %v2407_v0  ;;  %1471 = vmatpush1.bf16.msra.mxu1 %v2410_v1  ;;  %v2497_v0 = vld [vmem:[%s3298_s1 + $0x5a0] ss:$16 sps:$4 sm:$0xff]   ;;  %v2500_v1 = vld [vmem:[%s3298_s1 + $0x5a8] ss:$16 sps:$4 sm:$0xff]  }
  0x7c   :  { %1308 = vmatprep.subr.bf16.mxu0 %v2415_v2  ;;  %1472 = vmatprep.subr.bf16.mxu1 %v2418_v3  ;;  %v2505_v2 = vld [vmem:[%s3298_s1 + $0x5c4] ss:$16 sps:$4 sm:$0xff]   ;;  %v2508_v3 = vld [vmem:[%s3298_s1 + $0x5cc] ss:$16 sps:$4 sm:$0xff]  }
  0x7f   :  { %1309 = vmatpush1.bf16.msra.mxu0 %v2413_v4  ;;  %1473 = vmatpush1.bf16.msra.mxu1 %v2416_v5  ;;  %v2503_v4 = vld [vmem:[%s3298_s1 + $0x5c0] ss:$16 sps:$4 sm:$0xff]   ;;  %v2506_v5 = vld [vmem:[%s3298_s1 + $0x5c8] ss:$16 sps:$4 sm:$0xff]  }
  0x80   :  { %1319 = vmatprep.subr.bf16.mxu0 %v2421_v6  ;;  %1483 = vmatprep.subr.bf16.mxu1 %v2424_v8  ;;  %v2511_v6 = vld [vmem:[%s3298_s1 + $0x5e4] ss:$16 sps:$4 sm:$0xff]   ;;  %v2509_v8 = vld [vmem:[%s3298_s1 + $0x5e0] ss:$16 sps:$4 sm:$0xff]  }
  0x82   :  { %1311 = vmatmul.mubr.bf16.vlgmr.msra.gmra.mrb[0].mxu0 %v30_v10  ;;  %1475 = vmatmul.mubr.bf16.vlgmr.msra.gmra.mrb[0].mxu1 %v30_v10  ;;  %v25_v10 = vld [vmem:[%s3299_s0 + $0x20] sm:$0xff] }
  0x83   :  { %1320 = vmatpush1.bf16.msra.mxu0 %v2419_v9  ;;  %1484 = vmatpush1.bf16.msra.mxu1 %v2422_v11  ;;  %v2512_v9 = vld [vmem:[%s3298_s1 + $0x5e8] ss:$16 sps:$4 sm:$0xff]   ;;  %v2517_v11 = vld [vmem:[%s3298_s1 + $0x604] ss:$16 sps:$4 sm:$0xff]  }
  0x84   :  { %1321 = vmatprep.subr.bf16.mxu0 %v2427_v12  ;;  %1485 = vmatprep.subr.bf16.mxu1 %v2430_v13  ;;  %v2520_v12 = vld [vmem:[%s3298_s1 + $0x60c] ss:$16 sps:$4 sm:$0xff]   ;;  %v32_v13 = vpack.c.bf16 %v25_v10, %v25_v10 }
  0x85   :  { %1351 = vmatprep.mubr.bf16.mxu0 %v33_v15  ;;  %1515 = vmatprep.mubr.bf16.mxu1 %v33_v15  ;;  %v2518_v15 = vld [vmem:[%s3298_s1 + $0x608] ss:$16 sps:$4 sm:$0xff]  }
  0x87   :  { %1322 = vmatpush1.bf16.msra.mxu0 %v2425_v16  ;;  %1486 = vmatpush1.bf16.msra.mxu1 %v2428_v17  ;;  %v2521_v16 = vld [vmem:[%s3300_s3 + $0x40] sm:$0xff]  }
  0x88   :  { %1323 = vmatprep.subr.bf16.mxu0 %v2433_v18  ;;  %1487 = vmatprep.subr.bf16.mxu1 %v2436_v19  ;;  %v2522_v17 = vld [vmem:[%s3300_s3 + $0xc0] sm:$0xff]   ;;  %v2553_v18 = vmov 0   ;;  %v27_v19 = vld [vmem:[%s3299_s0 + $0x30] sm:$0xff] }
  0x8b   :  { %1324 = vmatpush1.bf16.msra.mxu0 %v2431_v20  ;;  %1488 = vmatpush1.bf16.msra.mxu1 %v2434_v21  ;;  %v34_v20 = vpack.c.bf16 %v27_v19, %v27_v19  ;;  %v2523_v21 = vld [vmem:[%s3300_s3] sm:$0xff]  }
  0x8c   :  { %1325 = vmatprep.subr.bf16.mxu0 %v2439_v22  ;;  %1489 = vmatprep.subr.bf16.mxu1 %v2442_v23  ;;  %v2524_v22 = vld [vmem:[%s3300_s3 + $0x80] sm:$0xff]   ;;  %v2525_v23 = vld [vmem:[%s3300_s3 + $0x48] sm:$0xff]  }
  0x8f   :  { %1326 = vmatpush1.bf16.msra.mxu0 %v2437_v24  ;;  %1490 = vmatpush1.bf16.msra.mxu1 %v2440_v25  ;;  %v2526_v24 = vld [vmem:[%s3300_s3 + $0xc8] sm:$0xff]  }
  0x90   :  { %1327 = vmatprep.subr.bf16.mxu0 %v2445_v26  ;;  %1491 = vmatprep.subr.bf16.mxu1 %v2448_v27  ;;  %v2527_v25 = vld [vmem:[%s3300_s3 + $0x8] sm:$0xff]   ;;  %v2529_v27 = vld [vmem:[%s3300_s3 + $0x50] sm:$0xff]  }
  0x91   :  { %v2528_v26 = vld [vmem:[%s3300_s3 + $0x88] sm:$0xff]  }
  0x93   :  { %1328 = vmatpush1.bf16.msra.mxu0 %v2443_v28  ;;  %1492 = vmatpush1.bf16.msra.mxu1 %v2446_v29  ;;  %v2530_v28 = vld [vmem:[%s3300_s3 + $0xd0] sm:$0xff]  }
  0x94   :  { %1329 = vmatprep.subr.bf16.mxu0 %v2451_v30  ;;  %1493 = vmatprep.subr.bf16.mxu1 %v2454_v31  ;;  %v2531_v29 = vld [vmem:[%s3300_s3 + $0x10] sm:$0xff]   ;;  %v2533_v31 = vld [vmem:[%s3300_s3 + $0x58] sm:$0xff]  }
  0x95   :  { %v2532_v30 = vld [vmem:[%s3300_s3 + $0x90] sm:$0xff]  }
  0x97   :  { %1330 = vmatpush1.bf16.msra.mxu0 %v2449_v32  ;;  %1494 = vmatpush1.bf16.msra.mxu1 %v2452_v33  ;;  %v2534_v32 = vld [vmem:[%s3300_s3 + $0xd8] sm:$0xff]  }
  0x98   :  { %1331 = vmatprep.subr.bf16.mxu0 %v2457_v34  ;;  %1495 = vmatprep.subr.bf16.mxu1 %v2460_v35  ;;  %v2535_v33 = vld [vmem:[%s3300_s3 + $0x18] sm:$0xff]   ;;  %v2537_v35 = vld [vmem:[%s3300_s3 + $0x60] sm:$0xff]  }
  0x99   :  { %v2536_v34 = vld [vmem:[%s3300_s3 + $0x98] sm:$0xff]  }
  0x9b   :  { %1332 = vmatpush1.bf16.msra.mxu0 %v2455_v36  ;;  %1496 = vmatpush1.bf16.msra.mxu1 %v2458_v37  ;;  %v2538_v36 = vld [vmem:[%s3300_s3 + $0xe0] sm:$0xff]  }
  0x9c   :  { %1333 = vmatprep.subr.bf16.mxu0 %v2463_v38  ;;  %1497 = vmatprep.subr.bf16.mxu1 %v2466_v39  ;;  %v2539_v37 = vld [vmem:[%s3300_s3 + $0x20] sm:$0xff]   ;;  %v2541_v39 = vld [vmem:[%s3300_s3 + $0x68] sm:$0xff]  }
  0x9d   :  { %v2540_v38 = vld [vmem:[%s3300_s3 + $0xa0] sm:$0xff]  }
  0x9f   :  { %1334 = vmatpush1.bf16.msra.mxu0 %v2461_v40  ;;  %1498 = vmatpush1.bf16.msra.mxu1 %v2464_v41  ;;  %v2542_v40 = vld [vmem:[%s3300_s3 + $0xe8] sm:$0xff]  }
  0xa0   :  { %1335 = vmatprep.subr.bf16.mxu0 %v2469_v42  ;;  %1499 = vmatprep.subr.bf16.mxu1 %v2472_v43  ;;  %v2543_v41 = vld [vmem:[%s3300_s3 + $0x28] sm:$0xff]   ;;  %v2545_v43 = vld [vmem:[%s3300_s3 + $0x70] sm:$0xff]  }
  0xa1   :  { %v2544_v42 = vld [vmem:[%s3300_s3 + $0xa8] sm:$0xff]  }
  0xa3   :  { %1336 = vmatpush1.bf16.msra.mxu0 %v2467_v44  ;;  %1500 = vmatpush1.bf16.msra.mxu1 %v2470_v45  ;;  %v2546_v44 = vld [vmem:[%s3300_s3 + $0xf0] sm:$0xff]  }
  0xa4   :  { %1337 = vmatprep.subr.bf16.mxu0 %v2475_v46  ;;  %1501 = vmatprep.subr.bf16.mxu1 %v2478_v47  ;;  %v2547_v45 = vld [vmem:[%s3300_s3 + $0x30] sm:$0xff]   ;;  %v2549_v47 = vld [vmem:[%s3300_s3 + $0x78] sm:$0xff]  }
  0xa5   :  { %v2548_v46 = vld [vmem:[%s3300_s3 + $0xb0] sm:$0xff]  }
  0xa7   :  { %1338 = vmatpush1.bf16.msra.mxu0 %v2473_v48  ;;  %1502 = vmatpush1.bf16.msra.mxu1 %v2476_v49  ;;  %v2550_v48 = vld [vmem:[%s3300_s3 + $0xf8] sm:$0xff]  }
  0xa8   :  { %1339 = vmatprep.subr.bf16.mxu0 %v2481_v50  ;;  %1503 = vmatprep.subr.bf16.mxu1 %v2484_v51  ;;  %v2551_v49 = vld [vmem:[%s3300_s3 + $0x38] sm:$0xff]   ;;  %v233_v51 = vlaneseq }
  0xa9   :  { %v2552_v50 = vld [vmem:[%s3300_s3 + $0xb8] sm:$0xff]  }
  0xab   :  { %1340 = vmatpush1.bf16.msra.mxu0 %v2479_v52  ;;  %1504 = vmatpush1.bf16.msra.mxu1 %v2482_v53  ;;  %v234_v52 = vshrl.u32 %v233_v51, 7 }
  0xac   :  { %1341 = vmatprep.subr.bf16.mxu0 %v2487_v54  ;;  %1505 = vmatprep.subr.bf16.mxu1 %v2490_v55  ;;  %v231_v55 = vld [vmem:[%s3301_s2] sm:$0xf] }
  0xad   :  { %v235_v53 = vsub.s32 0, %v234_v52  ;;  %v243_v54 = vsub.s32 2, %v234_v52 }
  0xaf   :  { %1342 = vmatpush1.bf16.msra.mxu0 %v2485_v56  ;;  %1506 = vmatpush1.bf16.msra.mxu1 %v2488_v57  ;;  %v239_v56 = vsub.s32 1, %v234_v52  ;;  %v247_v57 = vsub.s32 3, %v234_v52 }
  0xb0   :  { %1343 = vmatprep.subr.bf16.mxu0 %v2493_v58  ;;  %1507 = vmatprep.subr.bf16.mxu1 %v2496_v59  ;;  %v236_v58 = vrot.slane %v231_v55, %v235_v53  ;;  %v244_v59 = vrot.slane %v231_v55, %v243_v54 }
  0xb3   :  { %1344 = vmatpush1.bf16.msra.mxu0 %v2491_v60  ;;  %1508 = vmatpush1.bf16.msra.mxu1 %v2494_v61  ;;  %v240_v60 = vrot.slane %v231_v55, %v239_v56  ;;  %v248_v61 = vrot.slane %v231_v55, %v247_v57 }
  0xb4   :  { %1345 = vmatprep.subr.bf16.mxu0 %v2499_v62  ;;  %1509 = vmatprep.subr.bf16.mxu1 %v2502_v63 }
  0xb7   :  { %1346 = vmatpush1.bf16.msra.mxu0 %v2497_v0  ;;  %1510 = vmatpush1.bf16.msra.mxu1 %v2500_v1 }
  0xb8   :  { %1347 = vmatprep.subr.bf16.mxu0 %v2505_v2  ;;  %1511 = vmatprep.subr.bf16.mxu1 %v2508_v3 }
  0xbb   :  { %1348 = vmatpush1.bf16.msra.mxu0 %v2503_v4  ;;  %1512 = vmatpush1.bf16.msra.mxu1 %v2506_v5 }
  0xbc   :  { %1349 = vmatprep.subr.bf16.mxu0 %v2511_v6  ;;  %1513 = vmatprep.subr.bf16.mxu1 %v2514_v7 }
  0xbf   :  { %1350 = vmatpush1.bf16.msra.mxu0 %v2509_v8  ;;  %1514 = vmatpush1.bf16.msra.mxu1 %v2512_v9 }
  0xc0   :  { %1360 = vmatprep.subr.bf16.mxu0 %v2517_v11  ;;  %1524 = vmatprep.subr.bf16.mxu1 %v2520_v12 }
  0xc2   :  { %1352 = vmatmul.mubr.bf16.vlgmr.msra.gmra.mrb[0].mxu0 %v32_v13  ;;  %1516 = vmatmul.mubr.bf16.vlgmr.msra.gmra.mrb[0].mxu1 %v32_v13 }
  0xc3   :  { %1361 = vmatpush1.bf16.msra.mxu0 %v2515_v14  ;;  %1525 = vmatpush1.bf16.msra.mxu1 %v2518_v15 }
  0xc4   :  { %1392 = vmatprep.mubr.bf16.mxu0 %v2553_v18  ;;  %1556 = vmatprep.mubr.bf16.mxu1 %v2553_v18 }
  0xc5   :  { %2154 = vmatprep.subr.bf16.mxu0 %v2521_v16  ;;  %2176 = vmatprep.subr.bf16.mxu1 %v2522_v17 }
  0xce   :  { %2119 = vmatmul.mubr.msk.bf16.vlgmr.msra.gmra.mrb[0].mxu0 %vm1233_vm0, %v34_v20  ;;  %2120 = vmatmul.mubr.msk.bf16.vlgmr.msra.gmra.mrb[0].mxu1 %vm1233_vm0, %v34_v20  ;;  %v2121_v20 = vld [vmem:[%s3302_s4] ss:$0 sm:$0xff] }
  0xcf   :  { %2155 = vmatpush3.bf16.msra.mxu0 %v2523_v21  ;;  %2177 = vmatpush3.bf16.msra.mxu1 %v2524_v22 }
  0xd0   :  { %2156 = vmatprep.subr.bf16.mxu0 %v2525_v23  ;;  %2178 = vmatprep.subr.bf16.mxu1 %v2526_v24 }
  0xd3   :  { %2157 = vmatpush3.bf16.msra.mxu0 %v2527_v25  ;;  %2179 = vmatpush3.bf16.msra.mxu1 %v2528_v26 }
  0xd4   :  { %2158 = vmatprep.subr.bf16.mxu0 %v2529_v27  ;;  %2180 = vmatprep.subr.bf16.mxu1 %v2530_v28 }
  0xd7   :  { %2159 = vmatpush3.bf16.msra.mxu0 %v2531_v29  ;;  %2181 = vmatpush3.bf16.msra.mxu1 %v2532_v30 }
  0xd8   :  { %2160 = vmatprep.subr.bf16.mxu0 %v2533_v31  ;;  %2182 = vmatprep.subr.bf16.mxu1 %v2534_v32 }
  0xdb   :  { %2161 = vmatpush3.bf16.msra.mxu0 %v2535_v33  ;;  %2183 = vmatpush3.bf16.msra.mxu1 %v2536_v34 }
  0xdc   :  { %2162 = vmatprep.subr.bf16.mxu0 %v2537_v35  ;;  %2184 = vmatprep.subr.bf16.mxu1 %v2538_v36 }
  0xdf   :  { %2163 = vmatpush3.bf16.msra.mxu0 %v2539_v37  ;;  %2185 = vmatpush3.bf16.msra.mxu1 %v2540_v38 }
  0xe0   :  { %2164 = vmatprep.subr.bf16.mxu0 %v2541_v39  ;;  %2186 = vmatprep.subr.bf16.mxu1 %v2542_v40 }
  0xe3   :  { %2165 = vmatpush3.bf16.msra.mxu0 %v2543_v41  ;;  %2187 = vmatpush3.bf16.msra.mxu1 %v2544_v42 }
  0xe4   :  { %2166 = vmatprep.subr.bf16.mxu0 %v2545_v43  ;;  %2188 = vmatprep.subr.bf16.mxu1 %v2546_v44 }
  0xe7   :  { %2167 = vmatpush3.bf16.msra.mxu0 %v2547_v45  ;;  %2189 = vmatpush3.bf16.msra.mxu1 %v2548_v46 }
  0xe8   :  { %2168 = vmatprep.subr.bf16.mxu0 %v2549_v47  ;;  %2190 = vmatprep.subr.bf16.mxu1 %v2550_v48 }
  0xeb   :  { %2169 = vmatpush3.bf16.msra.mxu0 %v2551_v49  ;;  %2191 = vmatpush3.bf16.msra.mxu1 %v2552_v50 }
 0x1a1   :  { %v1394_v62 = vpop.f32.mrb[0].mxu0  ;;  %v1558_v63 = vpop.f32.mrb[0].mxu1 }
 0x1a2   :  { %v2198_v0 = vadd.f32 %v1394_v62, %v236_v58  ;;  %v2200_v1 = vadd.f32 %v1558_v63, %v244_v59  ;;  %v1396_v2 = vpop.f32.mrb[1].mxu0  ;;  %v1560_v3 = vpop.f32.mrb[1].mxu1 }
 0x1a3   :  { %v2199_v4 = vadd.f32 %v1396_v2, %v240_v60  ;;  %v2201_v5 = vadd.f32 %v1560_v3, %v248_v61  ;;  %v1398_v6 = vpop.f32.mrb[2].mxu0  ;;  %v1562_v7 = vpop.f32.mrb[2].mxu1 }
 0x1a4   :  { %v1565_v8 = vmax.f32 %v2198_v0, 0.0  ;;  %v1567_v9 = vmax.f32 %v2200_v1, 0.0  ;;  %v1399_v10 = vpop.f32.mrb[3].mxu0  ;;  %v1563_v11 = vpop.f32.mrb[3].mxu1 }
 0x1a5   :  { %v1566_v12 = vmax.f32 %v2199_v4, 0.0  ;;  %v1568_v13 = vmax.f32 %v2201_v5, 0.0 }
 0x1a6   :  { %v1569_v16 = vpack.c.bf16 %v1565_v8, %v1565_v8  ;;  %v1571_v17 = vpack.c.bf16 %v1567_v9, %v1567_v9 }
 0x1a7   :  { %v1570_v14 = vpack.c.bf16 %v1566_v12, %v1566_v12  ;;  %v1572_v15 = vpack.c.bf16 %v1568_v13, %v1568_v13 }
 0x1a9   :  { %1868 = vmatprep.mubr.bf16.mxu0 %v1570_v14  ;;  %1908 = vmatprep.mubr.bf16.mxu1 %v1572_v15 }
 0x1aa   :  { %1869 = vmatmul.mubr.bf16.vlgmr.msra.gmra.mrb[4].mxu0 %v1569_v16  ;;  %1909 = vmatmul.mubr.bf16.vlgmr.msra.gmra.mrb[4].mxu1 %v1571_v17 }
 0x27d   :  { %v2170_v18 = vpop.f32.mrb[4].mxu0  ;;  %v2192_v19 = vpop.f32.mrb[4].mxu1 }
 0x27e   :  { %v2171_v21 = vpop.f32.mrb[5].mxu0  ;;  %v2193_v22 = vpop.f32.mrb[5].mxu1 }
 0x27f   :  { %v2172_v23 = vadd.f32 %v2171_v21, %v2170_v18  ;;  %v2194_v24 = vadd.f32 %v2193_v22, %v2192_v19  ;;  %v2173_v25 = vpop.f32.mrb[6].mxu0  ;;  %v2195_v26 = vpop.f32.mrb[6].mxu1 }
 0x280   :  { %v2174_v27 = vpop.f32.mrb[7].mxu0  ;;  %v2196_v28 = vpop.f32.mrb[7].mxu1 }
 0x281   :  { %v1871_v29 = vadd.f32 %v2172_v23, %v2121_v20 }
 0x283   :  { %v1911_v30 = vadd.f32 %v2194_v24, %v1871_v29 }
 0x285   :  { %v1916_v31 = vmax.f32 %v1911_v30, 0.0 }
 0x287   :  { %v1917_v32 = vpack.c.bf16 %v1916_v31, %v1916_v31 }
 0x289   :  { %1918 = vst [vmem:[%s3303_s5] sm:$0xf] %v1917_v32 }

</bundles_post_ra>
